<compile_context>
chip_gen: v7x
topology: tpu7x:2x2x1
jax: 0.10.0
libtpu: 0.0.40
codegen_flags: <defaults>
</compile_context>

<pallas_src>
import functools

import numpy as np
import jax
import jax.numpy as jnp
from jax.experimental import pallas as pl
from jax.experimental.pallas import tpu as pltpu


# ----------------------------------------------------------------------------
# Kernel 1: batched attention branch (fc -> LayerNorm -> ReLU -> fused heads).
# ----------------------------------------------------------------------------
def _attention_kernel(pooled_ref, wfc_ref, gamma_ref, beta_ref, wh_ref, bh_ref,
                      att_ref):
    # pooled_ref: (B, C_in)    globally avg-pooled input
    # wfc_ref   : (C_in, A)    1x1 "fc" weight, pre-transposed (no bias)
    # gamma/beta: (1, A)       LayerNorm([A,1,1]) affine params
    # wh_ref    : (A, C_tot)   fused [channel | filter | spatial] head weights (pre-T)
    # bh_ref    : (1, C_tot)   fused head biases
    # att_ref   : (B, C_tot)   sigmoid attentions, lane-dense
    h = jnp.dot(pooled_ref[...], wfc_ref[...], preferred_element_type=jnp.float32)
    # nn.LayerNorm([A,1,1]), eps=1e-5, per-sample over the A axis
    mu = jnp.mean(h, axis=-1, keepdims=True)
    var = jnp.mean((h - mu) ** 2, axis=-1, keepdims=True)
    h = (h - mu) * jax.lax.rsqrt(var + 1e-5) * gamma_ref[...] + beta_ref[...]
    h = jnp.maximum(h, 0.0)                                   # ReLU
    logits = jnp.dot(h, wh_ref[...], preferred_element_type=jnp.float32) + bh_ref[...]
    att_ref[...] = jax.nn.sigmoid(logits)                     # temperature = 1.0


# ----------------------------------------------------------------------------
# Kernel 2: dx-folded implicit-im2col dynamic convolution.
# One (sample, C_out tile) per grid step; K GEMMs, each contracting over K*C_in.
# ----------------------------------------------------------------------------
def _odconv_kernel(w_ref, sae_ref, fa_ref, x_ref, o_ref, *, K, row_stride, P_pad):
    # w_ref  : (K, TCO, K*C_in)   bf16 pre-packed base weight, one slab per dy
    # sae_ref: (1, K, K*C_in)     f32 spatial attention expanded to the lane layout
    # fa_ref : (1, TCO, 1)        f32 filter attention for this (sample, C_out tile)
    # x_ref  : (1, K*C_in, XW)    bf16 dx-stacked, ca-scaled, zero-padded input
    # o_ref  : (1, TCO, P_pad)    output (model dtype), rows at W_pad stride, 128-pad
    acc = jnp.zeros(o_ref.shape[1:], jnp.float32)             # (TCO, P_pad)
    for dy in range(K):                                       # static unroll, K dots
        # fold spatial attention into the small weight slab (VPU work, bf16 operand)
        w_eff = (w_ref[dy] * sae_ref[0, dy:dy + 1, :]).astype(jnp.bfloat16)
        xs = x_ref[0, :, dy * row_stride:dy * row_stride + P_pad]   # (K*C_in, P_pad)
        acc = acc + jnp.dot(w_eff, xs, preferred_element_type=jnp.float32)
    # filter attention in the epilogue: no extra XLA pass over the biggest tensor
    o_ref[0] = (acc * fa_ref[0]).astype(o_ref.dtype)


def _vmem_capacity_bytes(default=64 * 1024 * 1024):
    try:
        info = pltpu.get_tpu_info()
        return int(getattr(info, "vmem_capacity_bytes", default))
    except Exception:
        return default


# ----------------------------------------------------------------------------
# Host wrapper
# ----------------------------------------------------------------------------
def odconv2d_forward(x, params, *, kernel_size=3, stride=1, padding=1, dilation=1):
    (weight, wfc, gamma, beta, wch, bch, wfl, bfl, wsp, bsp) = params
    assert stride == 1, "TODO(synk): stride > 1 not implemented in the Pallas path"
    B, C_in, H, W = x.shape
    kernel_num, C_out = weight.shape[0], weight.shape[1]
    assert kernel_num == 1 and weight.shape[2] == C_in  # kernel_num == 1, groups == 1
    K = kernel_size
    KK = K * K
    KC = K * C_in
    A = wfc.shape[0]
    H_pad, W_pad = H + 2 * padding, W + 2 * padding
    H_out = (H + 2 * padding - dilation * (K - 1) - 1) // stride + 1
    W_out = (W + 2 * padding - dilation * (K - 1) - 1) // stride + 1
    C_tot = C_in + C_out + KK
    out_dtype = x.dtype
    out_bytes = jnp.dtype(out_dtype).itemsize

    round_up = lambda v, m: (v + m - 1) // m * m
    P_acc = H_out * W_pad                      # flat output width (W_pad row stride)
    P_pad = round_up(P_acc, 128)               # lane-dense (full-width stores)
    row_stride = W_pad * dilation              # in-kernel lane offset per dy
    XW_stack = round_up((K - 1) * row_stride + P_pad, 128)   # dx-stacked slab width
    XW_base = (K - 1) * dilation + XW_stack                  # pre-stack flat width

    # ---- attention branch: XLA avg-pool + one batched lane-dense Pallas GEMM ----
    pooled = jnp.mean(x, axis=(2, 3))                                    # (B, C_in)
    wfc_t = jnp.transpose(wfc)                                           # (C_in, A)
    wheads_t = jnp.transpose(jnp.concatenate([wch, wfl, wsp], axis=0))   # (A, C_tot)
    bheads = jnp.concatenate([bch, bfl, bsp], axis=0).reshape(1, C_tot)
    g = gamma.reshape(1, A)
    be = beta.reshape(1, A)

    att = pl.pallas_call(
        _attention_kernel,
        out_shape=jax.ShapeDtypeStruct((B, C_tot), jnp.float32),
        grid=(1,),
        in_specs=[
            pl.BlockSpec((B, C_in), lambda i: (0, 0)),
            pl.BlockSpec((C_in, A), lambda i: (0, 0)),
            pl.BlockSpec((1, A), lambda i: (0, 0)),
            pl.BlockSpec((1, A), lambda i: (0, 0)),
            pl.BlockSpec((A, C_tot), lambda i: (0, 0)),
            pl.BlockSpec((1, C_tot), lambda i: (0, 0)),
        ],
        out_specs=pl.BlockSpec((B, C_tot), lambda i: (0, 0)),
        compiler_params=pltpu.CompilerParams(dimension_semantics=("arbitrary",)),
    )(pooled, wfc_t, g, be, wheads_t, bheads)

    ca = att[:, :C_in]                              # channel attention (B, C_in)
    fa = att[:, C_in:C_in + C_out]                  # filter attention  (B, C_out)
    sa = att[:, C_in + C_out:]                      # spatial attention (B, K*K)

    # ---- wrapper-side prep for the dx-folded implicit im2col ----
    # Channel attention folded into x once (fuses with pad + bf16 cast).
    x_scaled = x * ca.reshape(B, C_in, 1, 1)
    x_padded = jnp.pad(x_scaled, ((0, 0), (0, 0), (padding, padding), (padding, padding)))
    x_flat = x_padded.reshape(B, C_in, H_pad * W_pad).astype(jnp.bfloat16)
    x_flat = jnp.pad(x_flat, ((0, 0), (0, 0), (0, XW_base - H_pad * W_pad)))
    # dx-stacked slab: row block dx holds x shifted left by dx*dilation lanes,
    # so only K dy lane-slices remain in-kernel and the GEMM contracts over K*C_in.
    x_stacked = jnp.concatenate(
        [x_flat[:, :, dx * dilation:dx * dilation + XW_stack] for dx in range(K)],
        axis=1)                                                # (B, K*C_in, XW_stack)

    # Pre-packed bf16 weight: w_packed[dy, co, dx*C_in + ci] = weight[0][co, ci, dy, dx]
    w_kk = jnp.transpose(weight[0], (2, 3, 0, 1))              # (K, K, C_out, C_in)
    w_packed = jnp.transpose(w_kk, (0, 2, 1, 3)).reshape(K, C_out, KC).astype(jnp.bfloat16)

    # Spatial attention expanded to the packed lane layout: (B, K, K*C_in)
    sa_exp = jnp.repeat(sa.reshape(B, K, K), C_in, axis=2)
    fa3 = fa.reshape(B, C_out, 1)

    # ---- chip-aware VMEM budget and C_out tiling ----
    vmem_cap = _vmem_capacity_bytes()
    vmem_budget = max(vmem_cap - 12 * 1024 * 1024, 32 * 1024 * 1024)

    def _block_bytes(tco):
        w_b = K * tco * KC * 2                                 # bf16 weight tile
        sae_b = K * KC * 4
        fa_b = max(tco, 8) * 128 * 4                           # lane-padded tiny block
        x_b = KC * XW_stack * 2
        o_b = tco * P_pad * out_bytes
        acc_b = tco * P_pad * 4                                # f32 accumulator
        tmp_b = KC * P_pad * 2 + tco * KC * 2                  # slice copy + scaled w
        return 2 * (w_b + sae_b + fa_b + x_b + o_b) + acc_b + tmp_b

    def _choose_tco():
        divisors = [c for c in (512, 256, 128, 64, 32, 16, 8) if C_out % c == 0]
        for cand in divisors:
            if _block_bytes(cand) <= (vmem_budget * 3) // 4:
                return cand
        # TODO(synk): spatial (H_out-row) halo tiling when even the smallest tile
        # would overflow the budget (very large feature maps on v7x).
        return divisors[-1] if divisors else C_out

    TCO = _choose_tco()
    n_co = C_out // TCO
    vmem_limit = int(min(max(_block_bytes(TCO) + (8 << 20), 32 << 20), vmem_budget))

    # ---- grid order: keep the larger resident operand on the outer axis ----
    w_tile_bytes = K * TCO * KC * 2
    x_slab_bytes = KC * XW_stack * 2
    sample_major_traffic = B * n_co * w_tile_bytes + B * x_slab_bytes
    weight_major_traffic = n_co * w_tile_bytes + n_co * B * x_slab_bytes
    weight_major = (n_co > 1) and (weight_major_traffic < sample_major_traffic)

    if weight_major:
        grid = (n_co, B)
        b_of = lambda g0, g1: g1
        c_of = lambda g0, g1: g0
    else:
        grid = (B, n_co)
        b_of = lambda g0, g1: g0
        c_of = lambda g0, g1: g1

    kernel = functools.partial(_odconv_kernel, K=K, row_stride=row_stride, P_pad=P_pad)

    out_flat = pl.pallas_call(
        kernel,
        out_shape=jax.ShapeDtypeStruct((B, C_out, P_pad), out_dtype),
        grid=grid,
        in_specs=[
            pl.BlockSpec((K, TCO, KC), lambda g0, g1: (0, c_of(g0, g1), 0)),
            pl.BlockSpec((1, K, KC), lambda g0, g1: (b_of(g0, g1), 0, 0)),
            pl.BlockSpec((1, TCO, 1), lambda g0, g1: (b_of(g0, g1), c_of(g0, g1), 0)),
            pl.BlockSpec((1, KC, XW_stack), lambda g0, g1: (b_of(g0, g1), 0, 0)),
        ],
        out_specs=pl.BlockSpec((1, TCO, P_pad),
                               lambda g0, g1: (b_of(g0, g1), c_of(g0, g1), 0)),
        compiler_params=pltpu.CompilerParams(
            dimension_semantics=("parallel", "parallel"),
            vmem_limit_bytes=vmem_limit),
    )(w_packed, sa_exp, fa3, x_stacked)

    # Strip the 128-alignment tail and the W_pad-stride garbage columns
    # (filter attention already applied in-kernel).
    out = out_flat[:, :, :P_acc].reshape(B, C_out, H_out, W_pad)[..., :W_out]
    return out


# ----------------------------------------------------------------------------
# Pure-JAX reference (mirrors the PyTorch forward exactly) for validation.
# ----------------------------------------------------------------------------
def odconv2d_reference(x, params, *, kernel_size=3, stride=1, padding=1, dilation=1):
    (weight, wfc, gamma, beta, wch, bch, wfl, bfl, wsp, bsp) = params
    B, C_in, H, W = x.shape
    C_out = weight.shape[1]
    K = kernel_size

    pooled = x.mean(axis=(2, 3))                              # (B, C_in)
    h = pooled @ wfc.T                                        # (B, A)
    mu = h.mean(axis=1, keepdims=True)
    var = ((h - mu) ** 2).mean(axis=1, keepdims=True)
    h = (h - mu) / jnp.sqrt(var + 1e-5) * gamma.reshape(1, -1) + beta.reshape(1, -1)
    h = jnp.maximum(h, 0.0)
    ca = jax.nn.sigmoid(h @ wch.T + bch.reshape(1, -1))       # (B, C_in)
    fa = jax.nn.sigmoid(h @ wfl.T + bfl.reshape(1, -1))       # (B, C_out)
    sa = jax.nn.sigmoid(h @ wsp.T + bsp.reshape(1, -1))       # (B, K*K)

    xs = x * ca[:, :, None, None]
    agg_w = weight[0][None] * sa.reshape(B, 1, 1, K, K)       # (B, C_out, C_in, K, K)
    outs = []
    for b in range(B):
        o = jax.lax.conv_general_dilated(
            xs[b:b + 1], agg_w[b],
            window_strides=(stride, stride),
            padding=[(padding, padding), (padding, padding)],
            rhs_dilation=(dilation, dilation),
            dimension_numbers=('NCHW', 'OIHW', 'NCHW'))
        outs.append(o)
    out = jnp.concatenate(outs, axis=0) * fa[:, :, None, None]
    return out


if __name__ == "__main__":
    # Configuration (PyTorch defaults except small shapes): groups=1, kernel_num=1.
    B, C_in, C_out, H, W = 2, 4, 8, 16, 16
    K, stride, padding, dilation = 3, 1, 1, 1
    reduction, min_channel = 0.0625, 16
    A = max(int(C_in * reduction), min_channel)               # attention_channel = 16
    KK = K * K

    key = jax.random.PRNGKey(0)
    ks = jax.random.split(key, 8)
    # kaiming-normal-style deterministic init (fan_out, relu gain)
    weight = jax.random.normal(ks[0], (1, C_out, C_in, K, K), jnp.float32) * np.sqrt(2.0 / (C_out * KK))
    wfc = jax.random.normal(ks[1], (A, C_in), jnp.float32) * np.sqrt(2.0 / A)
    wch = jax.random.normal(ks[2], (C_in, A), jnp.float32) * np.sqrt(2.0 / C_in)
    wfl = jax.random.normal(ks[3], (C_out, A), jnp.float32) * np.sqrt(2.0 / C_out)
    wsp = jax.random.normal(ks[4], (KK, A), jnp.float32) * np.sqrt(2.0 / KK)
    gamma = jnp.ones((A, 1), jnp.float32)
    beta = jnp.zeros((A, 1), jnp.float32)
    bch = jnp.zeros((C_in, 1), jnp.float32)
    bfl = jnp.zeros((C_out, 1), jnp.float32)
    bsp = jnp.zeros((KK, 1), jnp.float32)
    params = (weight, wfc, gamma, beta, wch, bch, wfl, bfl, wsp, bsp)

    x = jax.random.normal(ks[5], (B, C_in, H, W), jnp.float32)

    out = odconv2d_forward(x, params, kernel_size=K, stride=stride,
                           padding=padding, dilation=dilation)
    out = jax.block_until_ready(out)

    ref = odconv2d_reference(x, params, kernel_size=K, stride=stride,
                             padding=padding, dilation=dilation)
    ref = jax.block_until_ready(ref)

    # bf16 MXU operands / bf16 pre-cast weights with f32 accumulation
    # -> relaxed tolerance vs the f32 reference.
    np.testing.assert_allclose(np.asarray(out), np.asarray(ref), rtol=2e-2, atol=2e-2)
    print("KERNEL_OK")
</pallas_src>

<mosaic_0001>
module attributes {stable_mosaic.version = 11 : i64} {
  func.func @_attention_kernel(%arg0: i32, %arg1: memref<2x4xf32, #tpu.memory_space<vmem>>, %arg2: memref<4x16xf32, #tpu.memory_space<vmem>>, %arg3: memref<1x16xf32, #tpu.memory_space<vmem>>, %arg4: memref<1x16xf32, #tpu.memory_space<vmem>>, %arg5: memref<16x21xf32, #tpu.memory_space<vmem>>, %arg6: memref<1x21xf32, #tpu.memory_space<vmem>>, %arg7: memref<2x21xf32, #tpu.memory_space<vmem>>) attributes {dimension_semantics = [#tpu.dimension_semantics<arbitrary>], iteration_bounds = array<i64: 1>, scalar_prefetch = 0 : i64, scratch_operands = 0 : i64, tpu.core_type = #tpu.core_type<tc>, window_params = [{pipeline_mode = #tpu.pipeline_mode<synchronous>, transform_indices = @transform_0, window_bounds = array<i64: 2, 4>}, {pipeline_mode = #tpu.pipeline_mode<synchronous>, transform_indices = @transform_1, window_bounds = array<i64: 4, 16>}, {pipeline_mode = #tpu.pipeline_mode<synchronous>, transform_indices = @transform_2, window_bounds = array<i64: 1, 16>}, {pipeline_mode = #tpu.pipeline_mode<synchronous>, transform_indices = @transform_3, window_bounds = array<i64: 1, 16>}, {pipeline_mode = #tpu.pipeline_mode<synchronous>, transform_indices = @transform_4, window_bounds = array<i64: 16, 21>}, {pipeline_mode = #tpu.pipeline_mode<synchronous>, transform_indices = @transform_5, window_bounds = array<i64: 1, 21>}, {pipeline_mode = #tpu.pipeline_mode<synchronous>, transform_indices = @transform_6, window_bounds = array<i64: 2, 21>}]} {
    %c0 = arith.constant 0 : index
    %c0_0 = arith.constant 0 : index
    %0 = vector.load %arg1[%c0, %c0_0] : memref<2x4xf32, #tpu.memory_space<vmem>>, vector<2x4xf32>
    %c0_1 = arith.constant 0 : index
    %c0_2 = arith.constant 0 : index
    %1 = vector.load %arg2[%c0_1, %c0_2] : memref<4x16xf32, #tpu.memory_space<vmem>>, vector<4x16xf32>
    %cst = arith.constant dense<0.000000e+00> : vector<2x16xf32>
    %2 = tpu.matmul %0, %1, %cst {dimension_numbers = #tpu.dot_dimension_numbers<[1], [0], [0], [1], [0, 0, 1, 1], [], []>} : vector<2x4xf32>, vector<4x16xf32>, vector<2x16xf32> -> vector<2x16xf32>
    %cst_3 = arith.constant dense<0.000000e+00> : vector<2xf32>
    %3 = vector.multi_reduction <add>, %2, %cst_3 [1] : vector<2x16xf32> to vector<2xf32>
    %4 = vector.shape_cast %3 : vector<2xf32> to vector<2x1xf32>
    %cst_4 = arith.constant 1.600000e+01 : f32
    %5 = vector.broadcast %cst_4 : f32 to vector<2x1xf32>
    %6 = arith.divf %4, %5 : vector<2x1xf32>
    %7 = vector.broadcast %6 : vector<2x1xf32> to vector<2x16xf32>
    %8 = arith.subf %2, %7 : vector<2x16xf32>
    %9 = arith.mulf %8, %8 : vector<2x16xf32>
    %cst_5 = arith.constant dense<0.000000e+00> : vector<2xf32>
    %10 = vector.multi_reduction <add>, %9, %cst_5 [1] : vector<2x16xf32> to vector<2xf32>
    %11 = vector.shape_cast %10 : vector<2xf32> to vector<2x1xf32>
    %cst_6 = arith.constant 1.600000e+01 : f32
    %12 = vector.broadcast %cst_6 : f32 to vector<2x1xf32>
    %13 = arith.divf %11, %12 : vector<2x1xf32>
    %14 = vector.broadcast %6 : vector<2x1xf32> to vector<2x16xf32>
    %15 = arith.subf %2, %14 : vector<2x16xf32>
    %cst_7 = arith.constant 9.99999974E-6 : f32
    %16 = vector.broadcast %cst_7 : f32 to vector<2x1xf32>
    %17 = arith.addf %13, %16 : vector<2x1xf32>
    %18 = math.rsqrt %17 : vector<2x1xf32>
    %19 = vector.broadcast %18 : vector<2x1xf32> to vector<2x16xf32>
    %20 = arith.mulf %15, %19 : vector<2x16xf32>
    %c0_8 = arith.constant 0 : index
    %c0_9 = arith.constant 0 : index
    %21 = vector.load %arg3[%c0_8, %c0_9] : memref<1x16xf32, #tpu.memory_space<vmem>>, vector<1x16xf32>
    %22 = vector.broadcast %21 : vector<1x16xf32> to vector<2x16xf32>
    %23 = arith.mulf %20, %22 : vector<2x16xf32>
    %c0_10 = arith.constant 0 : index
    %c0_11 = arith.constant 0 : index
    %24 = vector.load %arg4[%c0_10, %c0_11] : memref<1x16xf32, #tpu.memory_space<vmem>>, vector<1x16xf32>
    %25 = vector.broadcast %24 : vector<1x16xf32> to vector<2x16xf32>
    %26 = arith.addf %23, %25 : vector<2x16xf32>
    %cst_12 = arith.constant 0.000000e+00 : f32
    %27 = vector.broadcast %cst_12 : f32 to vector<2x16xf32>
    %28 = arith.maximumf %26, %27 : vector<2x16xf32>
    %c0_13 = arith.constant 0 : index
    %c0_14 = arith.constant 0 : index
    %29 = vector.load %arg5[%c0_13, %c0_14] : memref<16x21xf32, #tpu.memory_space<vmem>>, vector<16x21xf32>
    %cst_15 = arith.constant dense<0.000000e+00> : vector<2x21xf32>
    %30 = tpu.matmul %28, %29, %cst_15 {dimension_numbers = #tpu.dot_dimension_numbers<[1], [0], [0], [1], [0, 0, 1, 1], [], []>} : vector<2x16xf32>, vector<16x21xf32>, vector<2x21xf32> -> vector<2x21xf32>
    %c0_16 = arith.constant 0 : index
    %c0_17 = arith.constant 0 : index
    %31 = vector.load %arg6[%c0_16, %c0_17] : memref<1x21xf32, #tpu.memory_space<vmem>>, vector<1x21xf32>
    %32 = vector.broadcast %31 : vector<1x21xf32> to vector<2x21xf32>
    %33 = arith.addf %30, %32 : vector<2x21xf32>
    %34 = arith.negf %33 : vector<2x21xf32>
    %35 = math.exp %34 : vector<2x21xf32>
    %cst_18 = arith.constant 1.000000e+00 : f32
    %36 = vector.broadcast %cst_18 : f32 to vector<2x21xf32>
    %37 = arith.addf %36, %35 : vector<2x21xf32>
    %38 = arith.divf %36, %37 : vector<2x21xf32>
    %c0_19 = arith.constant 0 : index
    %c0_20 = arith.constant 0 : index
    %39 = vector.load %arg7[%c0_19, %c0_20] : memref<2x21xf32, #tpu.memory_space<vmem>>, vector<2x21xf32>
    tpu.vector_store %arg7[%c0_19, %c0_20], %38 {strides = array<i32>} : memref<2x21xf32, #tpu.memory_space<vmem>>, vector<2x21xf32>,
    return
  }
  func.func @transform_0(%arg0: i32) -> (i32, i32) {
    %c0_i32 = arith.constant 0 : i32
    %c0_i32_0 = arith.constant 0 : i32
    %c0_i32_1 = arith.constant 0 : i32
    return %c0_i32, %c0_i32_0 : i32, i32
  }
  func.func @transform_1(%arg0: i32) -> (i32, i32) {
    %c0_i32 = arith.constant 0 : i32
    %c0_i32_0 = arith.constant 0 : i32
    %c0_i32_1 = arith.constant 0 : i32
    return %c0_i32, %c0_i32_0 : i32, i32
  }
  func.func @transform_2(%arg0: i32) -> (i32, i32) {
    %c0_i32 = arith.constant 0 : i32
    %c0_i32_0 = arith.constant 0 : i32
    %c0_i32_1 = arith.constant 0 : i32
    return %c0_i32, %c0_i32_0 : i32, i32
  }
  func.func @transform_3(%arg0: i32) -> (i32, i32) {
    %c0_i32 = arith.constant 0 : i32
    %c0_i32_0 = arith.constant 0 : i32
    %c0_i32_1 = arith.constant 0 : i32
    return %c0_i32, %c0_i32_0 : i32, i32
  }
  func.func @transform_4(%arg0: i32) -> (i32, i32) {
    %c0_i32 = arith.constant 0 : i32
    %c0_i32_0 = arith.constant 0 : i32
    %c0_i32_1 = arith.constant 0 : i32
    return %c0_i32, %c0_i32_0 : i32, i32
  }
  func.func @transform_5(%arg0: i32) -> (i32, i32) {
    %c0_i32 = arith.constant 0 : i32
    %c0_i32_0 = arith.constant 0 : i32
    %c0_i32_1 = arith.constant 0 : i32
    return %c0_i32, %c0_i32_0 : i32, i32
  }
  func.func @transform_6(%arg0: i32) -> (i32, i32) {
    %c0_i32 = arith.constant 0 : i32
    %c0_i32_0 = arith.constant 0 : i32
    %c0_i32_1 = arith.constant 0 : i32
    return %c0_i32, %c0_i32_0 : i32, i32
  }
}

</mosaic_0001>

<bundles_post_ra>
// kernel: tpu_custom_call.1
= control target key start
LH: loop header
LB: loop body
LE: loop exit
PB: predicated region body
PF: predicated region fallthrough
CT: control target
= control target key end

     0   :  { %11 = vsyncpa [#allocation3], 0  ;;  %s517_s0 = inlined_call_operand.hbm [shape: f32[2,4], index: 0, kind: input, shape index: {}]   ;;  %s518_s1 = inlined_call_operand.hbm [shape: f32[4,16], index: 1, kind: input, shape index: {}]   ;;  %s519_s2 = inlined_call_operand.vmem [shape: f32[1,16], index: 2, kind: input, shape index: {}]   ;;  %s520_s3 = inlined_call_operand.vmem [shape: f32[1,16], index: 3, kind: input, shape index: {}]   ;;  %s521_s4 = inlined_call_operand.hbm [shape: f32[16,21], index: 4, kind: input, shape index: {}]   ;;  %s522_s5 = inlined_call_operand.vmem [shape: f32[1,21], index: 5, kind: input, shape index: {}]   ;;  %s523_s6 = inlined_call_operand.hbm [shape: f32[2,21], index: 6, kind: output, shape index: {}]  }
   0x1   :  { %12 = vsyncpa [#allocation6], 0 }
   0x2   :  { %13 = vsyncpa [#allocation4], 0  ;;  %s416_s21 = smov [#allocation5]   ;;  %s417_s23 = smov [#allocation2]  }
   0x3   :  { %s30_s22 = sshll.u32 %s416_s21, 4  ;;  %s20_s24 = sshll.u32 %s417_s23, 4  ;;  %s31_s22 = int_to_ptr.vmem [resolvable:$true] %s30_s22  ;;  %s21_s24 = int_to_ptr.vmem [resolvable:$true] %s20_s24 }
   0x4   :  { %s322_s27 = scalar_lea.hbm %s518_s1, 64 }
   0x5   :  { %p323_p0 = scmp.ne.s32.totalorder %s518_s1, %s322_s27  ;;  %p326_p1 = scmp.lt.u32.totalorder %s322_s27, %s518_s1 }
   0x7   :  { %p328_p2 = pnand %p326_p1, %p323_p0 }
   0x9   :  { %331 = shalt.err (!%p328_p2)
}
   0xa   :  { %s332_s8 = scalar_lea.vmem %s31_s22, 64  ;;  %p337_p4 = scmp.lt.s32.totalorder %s31_s22, %s31_s22 }
   0xb   :  { %p333_p3 = scmp.ne.s32.totalorder %s31_s22, %s332_s8  ;;  %p338_p5 = scmp.lt.s32.totalorder %s332_s8, %s332_s8 }
   0xd   :  { %p339_p6 = por %p338_p5, %p337_p4 }
   0xf   :  { %p340_p7 = pnand %p339_p6, %p333_p3 }
  0x11   :  { %343 = shalt.err (!%p340_p7)
}
  0x12   :  { %33 = dma.hbm_to_vmem [thread:$0]  %s518_s1, 64, %s31_s22, [#allocation6]  }
  0x13   :  { %s344_s13 = scalar_lea.hbm %s517_s0, 32 }
  0x14   :  { %p345_p8 = scmp.ne.s32.totalorder %s517_s0, %s344_s13  ;;  %p348_p9 = scmp.lt.u32.totalorder %s344_s13, %s517_s0 }
  0x16   :  { %p350_p10 = pnand %p348_p9, %p345_p8 }
  0x18   :  { %353 = shalt.err (!%p350_p10)
}
  0x19   :  { %s354_s18 = scalar_lea.vmem %s21_s24, 32  ;;  %p359_p12 = scmp.lt.s32.totalorder %s21_s24, %s21_s24 }
  0x1a   :  { %p355_p11 = scmp.ne.s32.totalorder %s21_s24, %s354_s18  ;;  %p360_p13 = scmp.lt.s32.totalorder %s354_s18, %s354_s18 }
  0x1c   :  { %p361_p0 = por %p360_p13, %p359_p12 }
  0x1e   :  { %p362_p1 = pnand %p361_p0, %p355_p11 }
  0x20   :  { %365 = shalt.err (!%p362_p1)
}
  0x21   :  { %23 = dma.hbm_to_vmem [thread:$0]  %s517_s0, 32, %s21_s24, [#allocation3]  }
  0x22   :  { %s418_s20 = smov [#allocation7]   ;;  %s366_s25 = scalar_lea.hbm %s521_s4, 256 }
  0x23   :  { %s43_s21 = sshll.u32 %s418_s20, 4  ;;  %p367_p2 = scmp.ne.s32.totalorder %s521_s4, %s366_s25  ;;  %s44_s21 = int_to_ptr.vmem [resolvable:$true] %s43_s21 }
  0x24   :  { %p370_p3 = scmp.lt.u32.totalorder %s366_s25, %s521_s4 }
  0x26   :  { %p372_p4 = pnand %p370_p3, %p367_p2 }
  0x28   :  { %375 = shalt.err (!%p372_p4)
}
  0x29   :  { %s376_s30 = scalar_lea.vmem %s44_s21, 256  ;;  %p381_p6 = scmp.lt.s32.totalorder %s44_s21, %s44_s21 }
  0x2a   :  { %p377_p5 = scmp.ne.s32.totalorder %s44_s21, %s376_s30  ;;  %p382_p7 = scmp.lt.s32.totalorder %s376_s30, %s376_s30 }
  0x2c   :  { %p383_p8 = por %p382_p7, %p381_p6 }
  0x2e   :  { %p384_p9 = pnand %p383_p8, %p377_p5 }
  0x30   :  { %387 = shalt.err (!%p384_p9)
}
  0x31   :  { %s419_s0 = smov 128   ;;  %s420_s24 = smov 8  }
  0x32   :  { %49 = dma.hbm_to_vmem [thread:$0]  %s521_s4, 256, %s44_s21, [#allocation6], %s419_s0, %s419_s0, %s420_s24  }
  0x33   :  { %410 = dma.done.wait [#allocation3], 32  }
  0x34   :  { %411 = vsyncadd [#allocation3], 4294967264 }
  0x35   :  { %412 = dma.done.wait [#allocation6], 320  }
  0x36   :  { %413 = vsyncadd [#allocation6], 4294966976  ;;  %v421_v0 = vmov 0.0   ;;  %vm422_vm0 = vmmov 0   ;;  %vm67_vm1 = vcmask 1043456   ;;  %vm63_vm2 = vcmask 31744  }
  0x37   :  { %292 = vmatprep.subr.mxu0 %v421_v0  ;;  %294 = vmatprep.mubr.msk.f32.mxu0 %vm422_vm0, %v421_v0  ;;  %v62_v1 = vld [vmem:[#allocation5] sm:$0xf]  ;;  %v61_v2 = vld [vmem:[#allocation2] sm:$0x3]  ;;  %vm141_vm3 = vcmask 123904   ;;  %v173_v11 = vld [vmem:[#allocation7] sm:$0xff] }
  0x38   :  { %301 = vmatprep.mubr.msk.f32.mxu1 %vm422_vm0, %v421_v0  ;;  %293 = vmatpush3.msk.msra.mxu0 %vm67_vm1, %v62_v1  ;;  %v174_v12 = vld [vmem:[#allocation7 + $0x8] sm:$0xff]  ;;  %v423_v13 = vmov 0.0|0.0   ;;  %v282_v19 = vld [vmem:[%s519_s2] ss:$0 sm:$0xff]  ;;  %vm182_vm4 = vcmask 130048   ;;  %s424_s2 = smov [#allocation8]  }
  0x39   :  { %295 = vmatmul.mubr.msk.f32.vlgmr.msra.gmra.mrb[0].mxu0 %vm63_vm2, %v61_v2  ;;  %304 = vmatprep.subr.bf16.mxu1 %v423_v13  ;;  %v305_v14 = vpack.c.bf16 %v174_v12, %v173_v11  ;;  %v283_v21 = vld [vmem:[%s520_s3] ss:$0 sm:$0xff]  ;;  %s270_s14 = sshll.u32 %s424_s2, 4  ;;  %vm262_vm5 = vcmask 164864   ;;  %s271_s14 = int_to_ptr.vmem [resolvable:$true] %s270_s14 }
  0x3a   :  { %v284_v25 = vld [vmem:[%s522_s5] ss:$0 sm:$0xff]  ;;  %s388_s3 = scalar_lea.vmem %s271_s14, 32  ;;  %p393_p11 = scmp.lt.s32.totalorder %s271_s14, %s271_s14 }
  0x3b   :  { %306 = vmatpush3.bf16.msra.mxu1 %v305_v14  ;;  %p389_p10 = scmp.ne.s32.totalorder %s271_s14, %s388_s3  ;;  %p394_p12 = scmp.lt.s32.totalorder %s388_s3, %s388_s3 }
  0x3d   :  { %p395_p13 = por %p394_p12, %p393_p11 }
  0x3f   :  { %p396_p0 = pnand %p395_p13, %p389_p10 }
 0x10c   :  { %v137_v3 = vpop.f32.mrb[0].mxu0 }
 0x10d   :  { %v296_v4 = vpop.f32.mrb[1].mxu0  ;;  %v142_v5 = vsel %vm141_vm3, %v137_v3, 0.0 }
 0x10e   :  { %143 = vadd.xlane.f32.xlu0 %v142_v5 }
 0x19b   :  { %v144_v6 = vpop.xlane.xlu0 %143 }
 0x19c   :  { %v146_v7 = vmul.f32 0.0625, %v144_v6 }
 0x19e   :  { %v147_v8 = vsub.f32 %v137_v3, %v146_v7 }
 0x1a0   :  { %v148_v9 = vmul.f32 %v147_v8, %v147_v8 }
 0x1a2   :  { %v149_v10 = vsel %vm141_vm3, %v148_v9, 0.0 }
 0x1a3   :  { %150 = vadd.xlane.f32.xlu0 %v149_v10 }
 0x230   :  { %v151_v15 = vpop.xlane.xlu0 %150 }
 0x231   :  { %v152_v16 = vmul.f32 0.0625, %v151_v15 }
 0x233   :  { %v153_v17 = vadd.f32 1e-05, %v152_v16 }
 0x235   :  { %316 = vrsqrt.f32 %v153_v17 }
 0x23f   :  { %v317_v18 = vpop.eup %316 }
 0x240   :  { %v155_v20 = vmul.f32 %v317_v18, %v147_v8 }
 0x242   :  { %v163_v22 = vmul.f32 %v282_v19, %v155_v20 }
 0x244   :  { %v171_v23 = vadd.f32 %v283_v21, %v163_v22 }
 0x246   :  { %v172_v24 = vmax.f32 %v171_v23, 0.0 }
 0x248   :  { %302 = vmatmul.mubr.msk.f32.vlgmr.msra.gmra.mrb[0].mxu1 %vm182_vm4, %v172_v24 }
 0x31b   :  { %v252_v26 = vpop.f32.mrb[0].mxu1 }
 0x31c   :  { %v253_v27 = vadd.f32 %v284_v25, %v252_v26  ;;  %v303_v28 = vpop.f32.mrb[1].mxu1 }
 0x31e   :  { %v286_v29 = vmul.f32 -1.442695, %v253_v27 }
 0x320   :  { %318 = vpow2.f32 %v286_v29 }
 0x32a   :  { %v319_v30 = vpop.eup %318 }
 0x32b   :  { %v259_v31 = vadd.f32 1.0, %v319_v30 }
 0x32d   :  { %320 = vrcp.f32 %v259_v31 }
 0x337   :  { %v321_v32 = vpop.eup %320 }
 0x338   :  { %263 = vst.msk [vmem:[#allocation8] sm:$0x3] %vm262_vm5, %v321_v32 }
 0x339   :  { %399 = shalt.err (!%p396_p0)
}
 0x33a   :  { %s400_s16 = scalar_lea.hbm %s523_s6, 32 }
 0x33b   :  { %p401_p1 = scmp.ne.s32.totalorder %s523_s6, %s400_s16  ;;  %p404_p2 = scmp.lt.u32.totalorder %s400_s16, %s523_s6 }
 0x33d   :  { %p406_p3 = pnand %p404_p2, %p401_p1 }
 0x33f   :  { %409 = shalt.err (!%p406_p3)
}
 0x340   :  { %273 = dma.vmem_to_hbm [thread:$0]  %s271_s14, 32, %s523_s6, [#allocation4]  }
 0x341   :  { %414 = dma.done.wait [#allocation4], 32  }
 0x342   :  { %415 = vsyncadd [#allocation4], 4294967264 }
 0x343   :  { %277 = vsyncpa [#allocation3], 1 }
 0x344   :  { %278 = vsyncpa [#allocation6], 1 }
 0x345   :  { %279 = vsyncpa [#allocation4], 1 }

</bundles_post_ra>
